<compile_context>
chip_gen: v7x
topology: tpu7x:2x2x1
jax: 0.10.0
libtpu: 0.0.40
codegen_flags: <defaults>
</compile_context>

<pallas_src>
import jax
import jax.numpy as jnp
from jax.experimental import pallas as pl
from jax.experimental.pallas import tpu as pltpu

LANE = 128
SUBLANE = 8
MAX_BLOCK_ROWS = 1024  # (1024,128) f32 = 512 KiB; x2 bufs x (in+out) ~ 2 MiB VMEM


def _make_kernel(static_gamma):
    """Build the elementwise kernel, optionally specialized on a static gamma."""

    def kernel(params_ref, x_ref, o_ref):
        # params_ref (SMEM, f32): [a = const_scale*scale, gamma, b = const_scale*offset]
        a = params_ref[0]
        b = params_ref[2]
        x = x_ref[...].astype(jnp.float32)  # compute in f32 on every TPU gen
        if static_gamma is not None and float(static_gamma) == 1.0:
            y = x                            # pure VPU, no EUP
        elif static_gamma is not None and float(static_gamma) == 2.0:
            y = x * x                        # pure VPU, no EUP
        else:
            y = jnp.power(x, params_ref[1])  # exp(gamma*log(x)) on the EUP
        o_ref[...] = (a * y - b).astype(o_ref.dtype)

    return kernel


def offset_gamma_correction(x, const_scale=1.0, scale=1.0, gamma=1.0, offset=0.0):
    """Elementwise const_scale * (scale * x**gamma - offset) via Pallas TPU."""
    orig_shape = x.shape
    orig_dtype = x.dtype
    n = x.size
    if n == 0:
        return x

    # Fold const_scale into the linear terms: out = a * x**gamma - b.
    a = jnp.float32(const_scale) * jnp.float32(scale)
    b = jnp.float32(const_scale) * jnp.float32(offset)
    static_gamma = float(gamma) if isinstance(gamma, (int, float)) else None
    params = jnp.stack([a, jnp.float32(gamma), b]).astype(jnp.float32)

    # Flatten to a lane-dense (rows, 128) slab in the ORIGINAL dtype.
    xf = x.reshape(-1)
    pad = (-n) % LANE
    if pad:
        # Only for numel not divisible by 128; pad value 1 keeps pow finite.
        xf = jnp.concatenate([xf, jnp.ones((pad,), dtype=xf.dtype)])
    rows = xf.shape[0] // LANE
    x2d = xf.reshape(rows, LANE)

    # Large fixed block; Pallas masks the ragged tail block (no divisibility loop).
    block_rows = MAX_BLOCK_ROWS if rows >= MAX_BLOCK_ROWS else rows
    grid = (pl.cdiv(rows, block_rows),)

    itemsize = jnp.dtype(orig_dtype).itemsize
    cost = pl.CostEstimate(
        flops=2 * n,
        transcendentals=(0 if static_gamma in (1.0, 2.0) else 2 * n),
        bytes_accessed=2 * n * itemsize,
    )

    out2d = pl.pallas_call(
        _make_kernel(static_gamma),
        out_shape=jax.ShapeDtypeStruct((rows, LANE), orig_dtype),
        grid_spec=pltpu.PrefetchScalarGridSpec(
            num_scalar_prefetch=0,
            grid=grid,
            in_specs=[
                pl.BlockSpec(memory_space=pltpu.MemorySpace.SMEM),
                pl.BlockSpec((block_rows, LANE), lambda i: (i, 0)),
            ],
            out_specs=pl.BlockSpec((block_rows, LANE), lambda i: (i, 0)),
        ),
        compiler_params=pltpu.CompilerParams(
            dimension_semantics=("parallel",),
        ),
        cost_estimate=cost,
    )(params, x2d)

    out = out2d.reshape(-1)
    if pad:
        out = out[:n]
    return out.reshape(orig_shape)


def _reference(x, const_scale, scale, gamma, offset):
    return const_scale * (scale * jnp.power(x.astype(jnp.float32), gamma) - offset)


if __name__ == "__main__":
    key = jax.random.PRNGKey(0)
    # NCHW input, positive values (pow with non-integer gamma needs x > 0 —
    # same domain the original module uses for intensity correction).
    B, C, H, W = 2, 4, 16, 16
    x = jax.random.uniform(key, (B, C, H, W), dtype=jnp.float32,
                           minval=0.05, maxval=1.0)

    const_scale, scale, gamma, offset = 1.5, 0.8, 2.2, 0.1

    # General (runtime gamma / EUP pow) path, f32 I/O.
    out = jax.block_until_ready(offset_gamma_correction(x, const_scale, scale, gamma, offset))
    ref = _reference(x, const_scale, scale, gamma, offset)
    assert out.shape == x.shape and out.dtype == x.dtype
    assert jnp.allclose(out, ref, rtol=1e-5, atol=1e-5), "mismatch vs reference (f32)"

    # Static-gamma fast path (gamma == 2.0 skips the EUP pow entirely).
    out2 = jax.block_until_ready(offset_gamma_correction(x, 1.0, 2.0, 2.0, 0.25))
    ref2 = _reference(x, 1.0, 2.0, 2.0, 0.25)
    assert jnp.allclose(out2, ref2, rtol=1e-5, atol=1e-5), "mismatch vs reference (gamma=2)"

    # bf16 I/O path: kernel streams bf16 from/to HBM, computes in f32.
    xb = x.astype(jnp.bfloat16)
    out3 = jax.block_until_ready(offset_gamma_correction(xb, const_scale, scale, gamma, offset))
    ref3 = _reference(xb.astype(jnp.float32), const_scale, scale, gamma, offset).astype(jnp.bfloat16)
    assert out3.dtype == jnp.bfloat16
    assert jnp.allclose(out3.astype(jnp.float32), ref3.astype(jnp.float32),
                        rtol=2e-2, atol=2e-2), "mismatch vs reference (bf16)"

    print("KERNEL_OK")
</pallas_src>

<mosaic_0001>
module attributes {stable_mosaic.version = 11 : i64} {
  func.func @kernel(%arg0: i32, %arg1: memref<3xf32, #tpu.memory_space<smem>>, %arg2: memref<16x128xf32, #tpu.memory_space<vmem>>, %arg3: memref<16x128xf32, #tpu.memory_space<vmem>>) attributes {dimension_semantics = [#tpu.dimension_semantics<parallel>], iteration_bounds = array<i64: 1>, scalar_prefetch = 0 : i64, scratch_operands = 0 : i64, tpu.core_type = #tpu.core_type<tc>, window_params = [{transform_indices = @transform_0, window_bounds = array<i64: 3>}, {transform_indices = @transform_1, window_bounds = array<i64: 16, 128>}, {transform_indices = @transform_2, window_bounds = array<i64: 16, 128>}]} {
    %c0 = arith.constant 0 : index
    %0 = memref.load %arg1[%c0] : memref<3xf32, #tpu.memory_space<smem>>
    %c2 = arith.constant 2 : index
    %1 = memref.load %arg1[%c2] : memref<3xf32, #tpu.memory_space<smem>>
    %c0_0 = arith.constant 0 : index
    %c0_1 = arith.constant 0 : index
    %2 = vector.load %arg2[%c0_0, %c0_1] : memref<16x128xf32, #tpu.memory_space<vmem>>, vector<16x128xf32>
    %c1 = arith.constant 1 : index
    %3 = memref.load %arg1[%c1] : memref<3xf32, #tpu.memory_space<smem>>
    %4 = vector.broadcast %3 : f32 to vector<16x128xf32>
    %5 = math.powf %2, %4 : vector<16x128xf32>
    %6 = vector.broadcast %0 : f32 to vector<16x128xf32>
    %7 = arith.mulf %6, %5 : vector<16x128xf32>
    %8 = vector.broadcast %1 : f32 to vector<16x128xf32>
    %9 = arith.subf %7, %8 : vector<16x128xf32>
    %c0_2 = arith.constant 0 : index
    %c0_3 = arith.constant 0 : index
    %10 = vector.load %arg3[%c0_2, %c0_3] : memref<16x128xf32, #tpu.memory_space<vmem>>, vector<16x128xf32>
    tpu.vector_store %arg3[%c0_2, %c0_3], %9 {strides = array<i32>} : memref<16x128xf32, #tpu.memory_space<vmem>>, vector<16x128xf32>,
    return
  }
  func.func @transform_0(%arg0: i32) -> i32 {
    %c0_i32 = arith.constant 0 : i32
    %c0_i32_0 = arith.constant 0 : i32
    return %c0_i32 : i32
  }
  func.func @transform_1(%arg0: i32) -> (i32, i32) {
    %c0_i32 = arith.constant 0 : i32
    %c0_i32_0 = arith.constant 0 : i32
    return %arg0, %c0_i32 : i32, i32
  }
  func.func @transform_2(%arg0: i32) -> (i32, i32) {
    %c0_i32 = arith.constant 0 : i32
    %c0_i32_0 = arith.constant 0 : i32
    return %arg0, %c0_i32 : i32, i32
  }
}

</mosaic_0001>

<bundles_post_ra>
// kernel: tpu_custom_call.1
= control target key start
LH: loop header
LB: loop body
LE: loop exit
PB: predicated region body
PF: predicated region fallthrough
CT: control target
= control target key end

     0   :  { %7 = vsyncpa [#allocation5], 0  ;;  %s498_s0 = inlined_call_operand.hbm [shape: f32[3], index: 0, kind: input, shape index: {}]   ;;  %s499_s1 = inlined_call_operand.hbm [shape: f32[16,128], index: 1, kind: input, shape index: {}]   ;;  %s500_s2 = inlined_call_operand.hbm [shape: f32[16,128], index: 2, kind: output, shape index: {}]  }
   0x1   :  { %8 = vsyncpa [#allocation3], 0 }
   0x2   :  { %9 = vsyncpa [#allocation4], 0  ;;  %s192_s11 = scalar_lea.hbm %s498_s0, 16 }
   0x3   :  { %p193_p0 = scmp.ne.s32.totalorder %s498_s0, %s192_s11  ;;  %p196_p1 = scmp.lt.u32.totalorder %s192_s11, %s498_s0 }
   0x5   :  { %p198_p2 = pnand %p196_p1, %p193_p0 }
   0x7   :  { %201 = shalt.err (!%p198_p2)
}
   0x8   :  { %s252_s16 = smov [#allocation2]   ;;  %s253_s19 = smov [#allocation6]  }
   0x9   :  { %17 = dma.hbm_to_smem %s498_s0, 16, %s252_s16, [#allocation5]  }
   0xa   :  { %s23_s20 = sshll.u32 %s253_s19, 4  ;;  %s202_s23 = scalar_lea.hbm %s499_s1, 256  ;;  %s24_s20 = int_to_ptr.vmem [resolvable:$true] %s23_s20 }
   0xb   :  { %p203_p3 = scmp.ne.s32.totalorder %s499_s1, %s202_s23  ;;  %p206_p4 = scmp.lt.u32.totalorder %s202_s23, %s499_s1 }
   0xd   :  { %p208_p5 = pnand %p206_p4, %p203_p3 }
   0xf   :  { %211 = shalt.err (!%p208_p5)
}
  0x10   :  { %s212_s28 = scalar_lea.vmem %s24_s20, 256  ;;  %p217_p7 = scmp.lt.s32.totalorder %s24_s20, %s24_s20 }
  0x11   :  { %p213_p6 = scmp.ne.s32.totalorder %s24_s20, %s212_s28  ;;  %p218_p8 = scmp.lt.s32.totalorder %s212_s28, %s212_s28 }
  0x13   :  { %p219_p9 = por %p218_p8, %p217_p7 }
  0x15   :  { %p220_p10 = pnand %p219_p9, %p213_p6 }
  0x17   :  { %223 = shalt.err (!%p220_p10)
}
  0x18   :  { %s254_s0 = smov 128   ;;  %s255_s29 = smov 8  }
  0x19   :  { %29 = dma.hbm_to_vmem [thread:$0]  %s499_s1, 256, %s24_s20, [#allocation3], %s254_s0, %s254_s0, %s255_s29  }
  0x1a   :  { %246 = dma.done.wait [#allocation5], 16  }
  0x1b   :  { %247 = vsyncadd [#allocation5], 4294967280 }
  0x1c   :  { %248 = dma.done.wait [#allocation3], 256  }
  0x1d   :  { %249 = vsyncadd [#allocation3], 4294967040 }
  0x1e   :  { %36 = sfence }
  0x1f   :  { %v301_v0 = vld [vmem:[#allocation6] sm:$0xff]  ;;  %s72_s4 = sld [smem:[#allocation2 + $0x1]]  ;;  %v306_v2 = vld [vmem:[#allocation6 + $0x8] sm:$0xff]  ;;  %v256_v18 = vmov 2139095040   ;;  %v257_v24 = vmov 0   ;;  %s393_s1 = sld [smem:[#allocation2]] }
  0x20   :  { %v304_v1 = vand.u32 2147483647, %v301_v0  ;;  %v310_v3 = vand.u32 2147483647, %v306_v2  ;;  %vm503_vm1 = vcmp.eq.f32.partialorder %v301_v0, 0  ;;  %vm502_vm8 = vcmp.lt.f32.partialorder %v301_v0, 0 }
  0x21   :  { %vm146_vm12 = vcmp.eq.f32.partialorder %v306_v2, 0  ;;  %s417_s5 = sld [smem:[#allocation2 + $0x2]]  ;;  %s258_s6 = smov [#allocation7]  }
  0x22   :  { %184 = vlog2.f32 %v304_v1  ;;  %vm97_vm4 = vcmp.gt.f32.partialorder %v304_v1, 1065353216  ;;  %vm149_vm14 = vcmp.gt.f32.partialorder %v310_v3, 1065353216  ;;  %s58_s7 = sshll.u32 %s258_s6, 4  ;;  %s59_s7 = int_to_ptr.vmem [resolvable:$true] %s58_s7 }
  0x23   :  { %186 = vlog2.f32 %v310_v3  ;;  %s224_s8 = scalar_lea.vmem %s59_s7, 256  ;;  %p229_p12 = scmp.lt.s32.totalorder %s59_s7, %s59_s7 }
  0x24   :  { %p225_p11 = scmp.ne.s32.totalorder %s59_s7, %s224_s8  ;;  %p230_p13 = scmp.lt.s32.totalorder %s224_s8, %s224_s8 }
  0x25   :  { %v313_v4 = vstv %s72_s4  ;;  %v45_v48 = vstv %s393_s1 }
  0x26   :  { %v316_v5 = vand.u32 2147483647, %v313_v4  ;;  %v82_v6 = vtrunc.f32 %v313_v4  ;;  %vm81_vm0 = vcmp.lt.f32.partialorder %v313_v4, 0  ;;  %p231_p0 = por %p230_p13, %p229_p12 }
  0x27   :  { %vm330_vm5 = vmand %vm81_vm0, %vm503_vm1  ;;  %v113_v19 = vsel %vm81_vm0, 0, %v256_v18  ;;  %v101_v25 = vsel %vm81_vm0, 2139095040, %v257_v24  ;;  %v48_v53 = vstv %s417_s5 }
  0x28   :  { %v86_v7 = vtrunc.f32 %v316_v5  ;;  %vm501_vm2 = vcmp.eq.f32.partialorder %v316_v5, 2139095040  ;;  %vm83_vm3 = vcmp.ne.f32.partialorder %v313_v4, %v82_v6  ;;  %vm342_vm7 = vmxor %vm81_vm0, %vm97_vm4  ;;  %vm85_vm15 = vcmp.lt.f32.partialorder %v316_v5, 1266679808  ;;  %p232_p1 = pnand %p231_p0, %p225_p11 }
  0x29   :  { %vm336_vm6 = vmor %vm83_vm3, %vm501_vm2  ;;  %v114_v21 = vxor.u32 2147483648, %v113_v19  ;;  %vm504_vm2 = vcmp.lt.f32.partialorder %v306_v2, 0 }
  0x2a   :  { %v87_v8 = vcvt.f32.s32 %v86_v7  ;;  %vm90_vm10 = vmneg %vm336_vm6 }
  0x2b   :  { %vm108_vm11 = vmor %vm330_vm5, %vm342_vm7  ;;  %vm148_vm5 = vcmp.lt.s32.totalorder %v306_v2, 0  ;;  %vm521_vm7 = vcmp.eq.f32.partialorder %v301_v0, 0 }
  0x2c   :  { %v185_v9 = vpop.eup %184  ;;  %v88_v11 = vand.u32 1, %v87_v8  ;;  %vm359_vm13 = vmand %vm502_vm8, %vm336_vm6  ;;  %v109_v27 = vsel %vm108_vm11, 2139095040, %v257_v24  ;;  %vm119_vm11 = vcmp.ne.f32.partialorder %v313_v4, %v313_v4 }
  0x2d   :  { %v75_v10 = vmul.f32 %v185_v9, %v313_v4  ;;  %v187_v13 = vpop.eup %186  ;;  %vm371_vm4 = vmand %vm81_vm0, %vm146_vm12 }
  0x2e   :  { %v127_v16 = vmul.f32 %v187_v13, %v313_v4  ;;  %vm89_vm9 = vcmp.eq.s32.totalorder %v88_v11, 1  ;;  %vm378_vm8 = vmxor %vm81_vm0, %vm149_vm14  ;;  %vm110_vm14 = vcmp.eq.f32.partialorder %v301_v0, 3212836864 }
  0x2f   :  { %188 = vpow2.f32 %v75_v10  ;;  %vm91_vm3 = vmand %vm89_vm9, %vm90_vm10  ;;  %vm96_vm9 = vcmp.lt.s32.totalorder %v301_v0, 0  ;;  %v111_v35 = vsel %vm110_vm14, 1065353216, %v109_v27 }
  0x30   :  { %190 = vpow2.f32 %v127_v16  ;;  %vm382_vm1 = vmand %vm85_vm15, %vm91_vm3  ;;  %vm118_vm15 = vcmp.ne.f32.partialorder %v301_v0, %v301_v0  ;;  %vm95_vm3 = vcmp.eq.f32.partialorder %v301_v0, 1065353216 }
  0x31   :  { %vm160_vm10 = vmor %vm371_vm4, %vm378_vm8  ;;  %v115_v30 = vsel %vm382_vm1, %v114_v21, %v113_v19  ;;  %vm170_vm4 = vcmp.ne.f32.partialorder %v306_v2, %v306_v2 }
  0x32   :  { %vm407_vm0 = vmand %vm504_vm2, %vm336_vm6  ;;  %v161_v33 = vsel %vm160_vm10, 2139095040, %v257_v24  ;;  %vm79_vm2 = vcmp.eq.f32.partialorder %v313_v4, 0 }
  0x33   :  { %vm103_vm6 = vmand %vm96_vm9, %vm382_vm1  ;;  %vm98_vm9 = vcmp.eq.f32.partialorder %v304_v1, 2139095040 }
  0x34   :  { %vm155_vm8 = vmand %vm148_vm5, %vm382_vm1  ;;  %vm525_vm1 = vcmp.eq.f32.partialorder %v316_v5, 2139095040  ;;  %vm80_vm5 = vcmp.eq.f32.partialorder %v313_v4, 1065353216 }
  0x35   :  { %vm455_vm10 = vmor %vm118_vm15, %vm119_vm11  ;;  %vm526_vm15 = vcmp.lt.f32.partialorder %v306_v2, 0 }
  0x36   :  { %vm122_vm14 = vmor %vm95_vm3, %vm79_vm2  ;;  %v168_v44 = vsel %vm526_vm15, %v115_v30, %v113_v19 }
  0x39   :  { %v189_v26 = vpop.eup %188 }
  0x3a   :  { %v100_v29 = vsel %vm359_vm13, 2143289344, %v189_v26  ;;  %v191_v31 = vpop.eup %190  ;;  %vm162_vm13 = vcmp.eq.f32.partialorder %v306_v2, 3212836864 }
  0x3b   :  { %v102_v32 = vsel %vm521_vm7, %v101_v25, %v100_v29  ;;  %v152_v36 = vsel %vm407_vm0, 2143289344, %v191_v31  ;;  %vm522_vm7 = vcmp.lt.f32.partialorder %v301_v0, 0  ;;  %v163_v42 = vsel %vm162_vm13, 1065353216, %v161_v33  ;;  %vm527_vm13 = vmmov %vm525_vm1 }
  0x3c   :  { %v104_v34 = vxor.u32 2147483648, %v102_v32  ;;  %v116_v37 = vsel %vm522_vm7, %v115_v30, %v113_v19  ;;  %v154_v38 = vsel %vm146_vm12, %v101_v25, %v152_v36  ;;  %vm147_vm12 = vcmp.eq.f32.partialorder %v306_v2, 1065353216 }
  0x3d   :  { %v156_v41 = vxor.u32 2147483648, %v154_v38  ;;  %vm150_vm0 = vcmp.eq.f32.partialorder %v310_v3, 2139095040  ;;  %vm174_vm3 = vmor %vm147_vm12, %vm79_vm2 }
  0x3e   :  { %v105_v39 = vsel %vm103_vm6, %v104_v34, %v102_v32  ;;  %vm172_vm6 = vmor %vm170_vm4, %vm119_vm11 }
  0x3f   :  { %v112_v43 = vsel %vm525_vm1, %v111_v35, %v105_v39  ;;  %v157_v46 = vsel %vm155_vm8, %v156_v41, %v154_v38 }
  0x40   :  { %v117_v45 = vsel %vm98_vm9, %v116_v37, %v112_v43  ;;  %v164_v49 = vsel %vm527_vm13, %v163_v42, %v157_v46 }
  0x41   :  { %v121_v47 = vsel %vm455_vm10, 2143289344, %v117_v45  ;;  %v169_v51 = vsel %vm150_vm0, %v168_v44, %v164_v49 }
  0x42   :  { %v123_v50 = vsel %vm122_vm14, 1065353216, %v121_v47  ;;  %v173_v54 = vsel %vm172_vm6, 2143289344, %v169_v51 }
  0x43   :  { %v124_v52 = vsel %vm80_vm5, %v301_v0, %v123_v50  ;;  %v175_v56 = vsel %vm174_vm3, 1065353216, %v173_v54 }
  0x44   :  { %v46_v55 = vmul.f32 %v124_v52, %v45_v48  ;;  %v176_v57 = vsel %vm80_vm5, %v306_v2, %v175_v56 }
  0x45   :  { %v47_v59 = vmul.f32 %v176_v57, %v45_v48 }
  0x46   :  { %v49_v58 = vsub.f32 %v46_v55, %v48_v53 }
  0x47   :  { %v50_v60 = vsub.f32 %v47_v59, %v48_v53 }
  0x48   :  { %51 = vst [vmem:[#allocation7] sm:$0xff] %v49_v58 }
  0x49   :  { %52 = vst [vmem:[#allocation7 + $0x8] sm:$0xff] %v50_v60 }
  0x4a   :  { %235 = shalt.err (!%p232_p1)
}
  0x4b   :  { %s236_s11 = scalar_lea.hbm %s500_s2, 256 }
  0x4c   :  { %p237_p2 = scmp.ne.s32.totalorder %s500_s2, %s236_s11  ;;  %p240_p3 = scmp.lt.u32.totalorder %s236_s11, %s500_s2 }
  0x4e   :  { %p242_p4 = pnand %p240_p3, %p237_p2 }
  0x50   :  { %245 = shalt.err (!%p242_p4)
}
  0x51   :  { %64 = dma.vmem_to_hbm [thread:$0]  %s59_s7, 256, %s500_s2, [#allocation4], %s254_s0, %s254_s0, %s255_s29  }
  0x52   :  { %250 = dma.done.wait [#allocation4], 256  }
  0x53   :  { %251 = vsyncadd [#allocation4], 4294967040 }
  0x54   :  { %68 = vsyncpa [#allocation3], 1 }
  0x55   :  { %69 = vsyncpa [#allocation4], 1 }
  0x56   :  { %70 = vsyncpa [#allocation5], 1 }

</bundles_post_ra>
